<compile_context>
chip_gen: v7x
topology: tpu7x:2x2x1
jax: 0.10.0
libtpu: 0.0.40
codegen_flags: <defaults>
</compile_context>

<pallas_src>
import math

import jax
import jax.numpy as jnp
import numpy as np
from jax.experimental import pallas as pl
from jax.experimental.pallas import tpu as pltpu

A_PAD = 128  # padded atoms per action: one full lane-width vreg block


def make_rainbow_kernel(num_actions: int, a_pad: int, hidden: int):
    """Builds the Pallas kernel body for the RainbowDQN forward pass."""
    na = num_actions

    def kernel(x_ref,
               w1_ref, b1_ref,
               w2_ref, b2_ref,
               wva1_ref, bva1_ref,
               wv2_ref, bv2_ref,
               wa2_ref, ba2_ref,
               out_ref):
        f32 = jnp.float32
        x = x_ref[...]

        # linear1 -> relu
        h = jnp.dot(x, w1_ref[...], preferred_element_type=f32) + b1_ref[...]
        h = jnp.maximum(h, 0.0)
        # linear2 -> relu
        h = jnp.dot(h, w2_ref[...], preferred_element_type=f32) + b2_ref[...]
        h = jnp.maximum(h, 0.0)

        # Fused value/advantage hidden layer (noisy_value1 | noisy_advantage1) -> relu.
        y = jnp.dot(h, wva1_ref[...], preferred_element_type=f32) + bva1_ref[...]
        y = jnp.maximum(y, 0.0)                                   # (B, 128)
        yv = y[:, :hidden]                                        # (B, 64) value stream
        ya = y[:, hidden:]                                        # (B, 64) advantage stream

        # Dense output layers (no structural zeros DMA'd).
        # Padded value lanes get bias -1e30 -> exp == 0 after the softmax shift.
        v = jnp.dot(yv, wv2_ref[...], preferred_element_type=f32) + bv2_ref[...]   # (B, A_PAD)
        # Padded advantage lanes have weight == bias == 0 -> cancel through the mean.
        a = jnp.dot(ya, wa2_ref[...], preferred_element_type=f32) + ba2_ref[...]   # (B, na*A_PAD)

        adv = [a[:, i * a_pad:(i + 1) * a_pad] for i in range(na)]  # aligned 128-lane blocks

        # mean over the action axis
        mean_a = adv[0]
        for s in adv[1:]:
            mean_a = mean_a + s
        mean_a = mean_a * (1.0 / float(na))

        # Dueling combine (v - mean hoisted out of the loop) + per-action softmax.
        vm = v - mean_a                                           # (B, A_PAD)
        ps = []
        for i in range(na):
            q = vm + adv[i]                                       # (B, A_PAD)
            q = q - jnp.max(q, axis=-1, keepdims=True)            # numerically stable
            e = jnp.exp(q)
            denom = jnp.sum(e, axis=-1, keepdims=True)
            # EUP reciprocal: moves the divide off the VALU crit path (rel. err ~2^-12).
            ps.append(e * pl.reciprocal(denom, approx=True))

        # Single lane-dense, unmasked store of the whole output tile.
        out_ref[...] = jnp.concatenate(ps, axis=1)                # (B, na*A_PAD)

    return kernel


def prepare_params(params, num_actions, num_atoms, a_pad=A_PAD):
    """One-time host-side parameter preparation.

    params: list of (weight (out,in), bias (out,)) in layer order
            [linear1, linear2, noisy_value1, noisy_value2, noisy_advantage1, noisy_advantage2]
    Returns the 10 arrays fed to the kernel (transposed, fused hidden layer, atom-padded
    DENSE output layers — no block-diagonal zeros are ever DMA'd).
    """
    f32 = jnp.float32
    (w1, b1), (w2, b2), (wv1, bv1), (wv2, bv2), (wa1, ba1), (wa2, ba2) = [
        (jnp.asarray(w, f32), jnp.asarray(b, f32)) for (w, b) in params
    ]
    A = num_atoms
    na = num_actions
    hidden = wv1.shape[0]              # 64

    w1t = w1.T                         # (num_inputs, 32)
    b1r = b1.reshape(1, -1)
    w2t = w2.T                         # (32, 64)
    b2r = b2.reshape(1, -1)

    # Fused (dense) hidden layer of the two streams: (64, 128)
    wva1 = jnp.concatenate([wv1.T, wa1.T], axis=1)
    bva1 = jnp.concatenate([bv1, ba1]).reshape(1, -1)

    # Dense value output layer, atom-padded to A_PAD lanes.
    wv2p = jnp.zeros((hidden, a_pad), f32).at[:, :A].set(wv2.T)
    bv2p = jnp.full((1, a_pad), -1e30, f32).at[0, :A].set(bv2)   # padded value logits -> exp()==0

    # Dense advantage output layer, one aligned A_PAD block per action.
    wa2p = jnp.zeros((hidden, na * a_pad), f32)
    ba2p = jnp.zeros((1, na * a_pad), f32)
    for i in range(na):
        c0 = i * a_pad
        wa2p = wa2p.at[:, c0:c0 + A].set(wa2.T[:, i * A:(i + 1) * A])
        ba2p = ba2p.at[0, c0:c0 + A].set(ba2[i * A:(i + 1) * A])

    # --- padding-correctness invariants (softmax over real atoms stays exact) ---
    # Padded ADVANTAGE weights & biases must be exactly 0 (cancel through the action mean);
    # padded VALUE biases must be -1e30 (exp -> 0). Do not change one without the other.
    wa2p_np, ba2p_np, bv2p_np = np.asarray(wa2p), np.asarray(ba2p), np.asarray(bv2p)
    for i in range(na):
        c0 = i * a_pad
        assert np.all(wa2p_np[:, c0 + A:c0 + a_pad] == 0.0)
        assert np.all(ba2p_np[0, c0 + A:c0 + a_pad] == 0.0)
    assert np.all(bv2p_np[0, A:a_pad] == -1e30)

    return (w1t, b1r, w2t, b2r, wva1, bva1, wv2p, bv2p, wa2p, ba2p)


def make_rainbow_forward(num_actions, num_atoms, hidden=64, a_pad=A_PAD):
    """Returns a jitted forward: (x, prepared_params) -> (B, num_actions, num_atoms)."""
    kernel = make_rainbow_kernel(num_actions, a_pad, hidden)

    @jax.jit
    def forward(x, prepped):
        x = x.astype(jnp.float32)
        B = x.shape[0]
        out_w = num_actions * a_pad
        # advisory cost estimate (tiny problem; helps XLA schedule around it)
        flops = 2 * B * (x.shape[1] * 32 + 32 * 64 + 64 * 128
                         + hidden * a_pad + hidden * num_actions * a_pad)
        bytes_accessed = 4 * (x.size + int(sum(int(p.size) for p in prepped)) + B * out_w)

        out2d = pl.pallas_call(
            kernel,
            out_shape=jax.ShapeDtypeStruct((B, out_w), jnp.float32),
            in_specs=[pl.BlockSpec(memory_space=pltpu.MemorySpace.VMEM)] * (1 + len(prepped)),
            out_specs=pl.BlockSpec(memory_space=pltpu.MemorySpace.VMEM),
            compiler_params=pltpu.CompilerParams(vmem_limit_bytes=8 * 1024 * 1024),
            cost_estimate=pl.CostEstimate(
                flops=flops,
                transcendentals=B * num_actions * (a_pad + 1),
                bytes_accessed=bytes_accessed),
        )(x, *prepped)

        # lane-dense kernel output -> (B, na, A_PAD) -> drop the padded atoms
        return out2d.reshape(B, num_actions, a_pad)[:, :, :num_atoms]

    return forward


# ----------------------------------------------------------------------------
# Deterministic parameter construction (mirrors the torch module's __init__).
# ----------------------------------------------------------------------------
def _scale_noise(key, n):
    x = jax.random.normal(key, (n,), jnp.float32)
    return jnp.sign(x) * jnp.sqrt(jnp.abs(x))


def init_rainbow_params(key, num_inputs, num_actions, num_atoms, std_init=0.4):
    keys = iter(jax.random.split(key, 64))

    def linear(in_f, out_f):
        bound = 1.0 / math.sqrt(in_f)
        w = jax.random.uniform(next(keys), (out_f, in_f), jnp.float32, -bound, bound)
        b = jax.random.uniform(next(keys), (out_f,), jnp.float32, -bound, bound)
        return w, b

    def noisy(in_f, out_f):
        mu_range = 1.0 / math.sqrt(in_f)
        w_mu = jax.random.uniform(next(keys), (out_f, in_f), jnp.float32, -mu_range, mu_range)
        w_sigma = jnp.full((out_f, in_f), std_init / math.sqrt(in_f), jnp.float32)
        b_mu = jax.random.uniform(next(keys), (out_f,), jnp.float32, -mu_range, mu_range)
        b_sigma = jnp.full((out_f,), std_init / math.sqrt(out_f), jnp.float32)
        eps_in = _scale_noise(next(keys), in_f)
        eps_out = _scale_noise(next(keys), out_f)
        w_eps = jnp.outer(eps_out, eps_in)
        b_eps = _scale_noise(next(keys), out_f)
        # training mode: weight = mu + sigma * eps
        return w_mu + w_sigma * w_eps, b_mu + b_sigma * b_eps

    return [
        linear(num_inputs, 32),                       # linear1
        linear(32, 64),                               # linear2
        noisy(64, 64),                                # noisy_value1
        noisy(64, num_atoms),                         # noisy_value2
        noisy(64, 64),                                # noisy_advantage1
        noisy(64, num_atoms * num_actions),           # noisy_advantage2
    ]


def rainbow_reference(x, params, num_actions, num_atoms):
    """Pure-JAX reference of the torch forward for correctness checking."""
    (w1, b1), (w2, b2), (wv1, bv1), (wv2, bv2), (wa1, ba1), (wa2, ba2) = params
    h = jax.nn.relu(x @ w1.T + b1)
    h = jax.nn.relu(h @ w2.T + b2)
    v = jax.nn.relu(h @ wv1.T + bv1)
    v = v @ wv2.T + bv2
    a = jax.nn.relu(h @ wa1.T + ba1)
    a = a @ wa2.T + ba2
    B = x.shape[0]
    v = v.reshape(B, 1, num_atoms)
    a = a.reshape(B, num_actions, num_atoms)
    q = v + a - a.mean(axis=1, keepdims=True)
    p = jax.nn.softmax(q.reshape(-1, num_atoms), axis=-1)
    return p.reshape(B, num_actions, num_atoms)


if __name__ == "__main__":
    # CartPole-like dimensions (small, as implied by the module).
    B, NUM_INPUTS, NUM_ACTIONS, NUM_ATOMS = 8, 4, 2, 51

    key = jax.random.PRNGKey(0)
    pkey, xkey = jax.random.split(key)
    params = init_rainbow_params(pkey, NUM_INPUTS, NUM_ACTIONS, NUM_ATOMS)
    x = jax.random.normal(xkey, (B, NUM_INPUTS), jnp.float32)

    # one-time preprocessing (transposes / fusion / atom padding), hoisted off the hot path
    prepped = prepare_params(params, NUM_ACTIONS, NUM_ATOMS, A_PAD)
    forward = make_rainbow_forward(NUM_ACTIONS, NUM_ATOMS, hidden=64, a_pad=A_PAD)

    out = jax.block_until_ready(forward(x, prepped))

    ref = rainbow_reference(x, params, NUM_ACTIONS, NUM_ATOMS)
    assert out.shape == (B, NUM_ACTIONS, NUM_ATOMS)
    # tolerance accounts for the approx EUP reciprocal in the softmax (rel. err ~2^-12)
    np.testing.assert_allclose(np.asarray(out), np.asarray(ref), rtol=1e-3, atol=5e-4)

    print("KERNEL_OK")
</pallas_src>

<mosaic_0001>
module attributes {stable_mosaic.version = 11 : i64} {
  func.func @kernel(%arg0: memref<8x4xf32, #tpu.memory_space<vmem>>, %arg1: memref<4x32xf32, #tpu.memory_space<vmem>>, %arg2: memref<1x32xf32, #tpu.memory_space<vmem>>, %arg3: memref<32x64xf32, #tpu.memory_space<vmem>>, %arg4: memref<1x64xf32, #tpu.memory_space<vmem>>, %arg5: memref<64x128xf32, #tpu.memory_space<vmem>>, %arg6: memref<1x128xf32, #tpu.memory_space<vmem>>, %arg7: memref<64x128xf32, #tpu.memory_space<vmem>>, %arg8: memref<1x128xf32, #tpu.memory_space<vmem>>, %arg9: memref<64x256xf32, #tpu.memory_space<vmem>>, %arg10: memref<1x256xf32, #tpu.memory_space<vmem>>, %arg11: memref<8x256xf32, #tpu.memory_space<vmem>>) attributes {dimension_semantics = [], scalar_prefetch = 0 : i64, scratch_operands = 0 : i64, tpu.core_type = #tpu.core_type<tc>} {
    %c0 = arith.constant 0 : index
    %c0_0 = arith.constant 0 : index
    %0 = vector.load %arg0[%c0, %c0_0] : memref<8x4xf32, #tpu.memory_space<vmem>>, vector<8x4xf32>
    %c0_1 = arith.constant 0 : index
    %c0_2 = arith.constant 0 : index
    %1 = vector.load %arg1[%c0_1, %c0_2] : memref<4x32xf32, #tpu.memory_space<vmem>>, vector<4x32xf32>
    %cst = arith.constant dense<0.000000e+00> : vector<8x32xf32>
    %2 = tpu.matmul %0, %1, %cst {dimension_numbers = #tpu.dot_dimension_numbers<[1], [0], [0], [1], [0, 0, 1, 1], [], []>} : vector<8x4xf32>, vector<4x32xf32>, vector<8x32xf32> -> vector<8x32xf32>
    %c0_3 = arith.constant 0 : index
    %c0_4 = arith.constant 0 : index
    %3 = vector.load %arg2[%c0_3, %c0_4] : memref<1x32xf32, #tpu.memory_space<vmem>>, vector<1x32xf32>
    %4 = vector.broadcast %3 : vector<1x32xf32> to vector<8x32xf32>
    %5 = arith.addf %2, %4 : vector<8x32xf32>
    %cst_5 = arith.constant 0.000000e+00 : f32
    %6 = vector.broadcast %cst_5 : f32 to vector<8x32xf32>
    %7 = arith.maximumf %5, %6 : vector<8x32xf32>
    %c0_6 = arith.constant 0 : index
    %c0_7 = arith.constant 0 : index
    %8 = vector.load %arg3[%c0_6, %c0_7] : memref<32x64xf32, #tpu.memory_space<vmem>>, vector<32x64xf32>
    %cst_8 = arith.constant dense<0.000000e+00> : vector<8x64xf32>
    %9 = tpu.matmul %7, %8, %cst_8 {dimension_numbers = #tpu.dot_dimension_numbers<[1], [0], [0], [1], [0, 0, 1, 1], [], []>} : vector<8x32xf32>, vector<32x64xf32>, vector<8x64xf32> -> vector<8x64xf32>
    %c0_9 = arith.constant 0 : index
    %c0_10 = arith.constant 0 : index
    %10 = vector.load %arg4[%c0_9, %c0_10] : memref<1x64xf32, #tpu.memory_space<vmem>>, vector<1x64xf32>
    %11 = vector.broadcast %10 : vector<1x64xf32> to vector<8x64xf32>
    %12 = arith.addf %9, %11 : vector<8x64xf32>
    %cst_11 = arith.constant 0.000000e+00 : f32
    %13 = vector.broadcast %cst_11 : f32 to vector<8x64xf32>
    %14 = arith.maximumf %12, %13 : vector<8x64xf32>
    %c0_12 = arith.constant 0 : index
    %c0_13 = arith.constant 0 : index
    %15 = vector.load %arg5[%c0_12, %c0_13] : memref<64x128xf32, #tpu.memory_space<vmem>>, vector<64x128xf32>
    %cst_14 = arith.constant dense<0.000000e+00> : vector<8x128xf32>
    %16 = tpu.matmul %14, %15, %cst_14 {dimension_numbers = #tpu.dot_dimension_numbers<[1], [0], [0], [1], [0, 0, 1, 1], [], []>} : vector<8x64xf32>, vector<64x128xf32>, vector<8x128xf32> -> vector<8x128xf32>
    %c0_15 = arith.constant 0 : index
    %c0_16 = arith.constant 0 : index
    %17 = vector.load %arg6[%c0_15, %c0_16] : memref<1x128xf32, #tpu.memory_space<vmem>>, vector<1x128xf32>
    %18 = vector.broadcast %17 : vector<1x128xf32> to vector<8x128xf32>
    %19 = arith.addf %16, %18 : vector<8x128xf32>
    %cst_17 = arith.constant 0.000000e+00 : f32
    %20 = vector.broadcast %cst_17 : f32 to vector<8x128xf32>
    %21 = arith.maximumf %19, %20 : vector<8x128xf32>
    %22 = vector.extract_strided_slice %21 {offsets = [0, 0], sizes = [8, 64], strides = [1, 1]} : vector<8x128xf32> to vector<8x64xf32>
    %23 = vector.extract_strided_slice %21 {offsets = [0, 64], sizes = [8, 64], strides = [1, 1]} : vector<8x128xf32> to vector<8x64xf32>
    %c0_18 = arith.constant 0 : index
    %c0_19 = arith.constant 0 : index
    %24 = vector.load %arg7[%c0_18, %c0_19] : memref<64x128xf32, #tpu.memory_space<vmem>>, vector<64x128xf32>
    %cst_20 = arith.constant dense<0.000000e+00> : vector<8x128xf32>
    %25 = tpu.matmul %22, %24, %cst_20 {dimension_numbers = #tpu.dot_dimension_numbers<[1], [0], [0], [1], [0, 0, 1, 1], [], []>} : vector<8x64xf32>, vector<64x128xf32>, vector<8x128xf32> -> vector<8x128xf32>
    %c0_21 = arith.constant 0 : index
    %c0_22 = arith.constant 0 : index
    %26 = vector.load %arg8[%c0_21, %c0_22] : memref<1x128xf32, #tpu.memory_space<vmem>>, vector<1x128xf32>
    %27 = vector.broadcast %26 : vector<1x128xf32> to vector<8x128xf32>
    %28 = arith.addf %25, %27 : vector<8x128xf32>
    %c0_23 = arith.constant 0 : index
    %c0_24 = arith.constant 0 : index
    %29 = vector.load %arg9[%c0_23, %c0_24] : memref<64x256xf32, #tpu.memory_space<vmem>>, vector<64x256xf32>
    %cst_25 = arith.constant dense<0.000000e+00> : vector<8x256xf32>
    %30 = tpu.matmul %23, %29, %cst_25 {dimension_numbers = #tpu.dot_dimension_numbers<[1], [0], [0], [1], [0, 0, 1, 1], [], []>} : vector<8x64xf32>, vector<64x256xf32>, vector<8x256xf32> -> vector<8x256xf32>
    %c0_26 = arith.constant 0 : index
    %c0_27 = arith.constant 0 : index
    %31 = vector.load %arg10[%c0_26, %c0_27] : memref<1x256xf32, #tpu.memory_space<vmem>>, vector<1x256xf32>
    %32 = vector.broadcast %31 : vector<1x256xf32> to vector<8x256xf32>
    %33 = arith.addf %30, %32 : vector<8x256xf32>
    %34 = vector.extract_strided_slice %33 {offsets = [0, 0], sizes = [8, 128], strides = [1, 1]} : vector<8x256xf32> to vector<8x128xf32>
    %35 = vector.extract_strided_slice %33 {offsets = [0, 128], sizes = [8, 128], strides = [1, 1]} : vector<8x256xf32> to vector<8x128xf32>
    %36 = arith.addf %34, %35 : vector<8x128xf32>
    %cst_28 = arith.constant 5.000000e-01 : f32
    %37 = vector.broadcast %cst_28 : f32 to vector<8x128xf32>
    %38 = arith.mulf %36, %37 : vector<8x128xf32>
    %39 = arith.subf %28, %38 : vector<8x128xf32>
    %40 = arith.addf %39, %34 : vector<8x128xf32>
    %cst_29 = arith.constant dense<0xFF800000> : vector<8xf32>
    %41 = vector.multi_reduction <maximumf>, %40, %cst_29 [1] : vector<8x128xf32> to vector<8xf32>
    %42 = vector.shape_cast %41 : vector<8xf32> to vector<8x1xf32>
    %43 = vector.broadcast %42 : vector<8x1xf32> to vector<8x128xf32>
    %44 = arith.subf %40, %43 : vector<8x128xf32>
    %45 = math.exp %44 : vector<8x128xf32>
    %cst_30 = arith.constant dense<0.000000e+00> : vector<8xf32>
    %46 = vector.multi_reduction <add>, %45, %cst_30 [1] : vector<8x128xf32> to vector<8xf32>
    %47 = vector.shape_cast %46 : vector<8xf32> to vector<8x1xf32>
    %48 = tpu.reciprocal %47 {approx = true} : vector<8x1xf32> -> vector<8x1xf32>
    %49 = vector.broadcast %48 : vector<8x1xf32> to vector<8x128xf32>
    %50 = arith.mulf %45, %49 : vector<8x128xf32>
    %51 = arith.addf %39, %35 : vector<8x128xf32>
    %cst_31 = arith.constant dense<0xFF800000> : vector<8xf32>
    %52 = vector.multi_reduction <maximumf>, %51, %cst_31 [1] : vector<8x128xf32> to vector<8xf32>
    %53 = vector.shape_cast %52 : vector<8xf32> to vector<8x1xf32>
    %54 = vector.broadcast %53 : vector<8x1xf32> to vector<8x128xf32>
    %55 = arith.subf %51, %54 : vector<8x128xf32>
    %56 = math.exp %55 : vector<8x128xf32>
    %cst_32 = arith.constant dense<0.000000e+00> : vector<8xf32>
    %57 = vector.multi_reduction <add>, %56, %cst_32 [1] : vector<8x128xf32> to vector<8xf32>
    %58 = vector.shape_cast %57 : vector<8xf32> to vector<8x1xf32>
    %59 = tpu.reciprocal %58 {approx = true} : vector<8x1xf32> -> vector<8x1xf32>
    %60 = vector.broadcast %59 : vector<8x1xf32> to vector<8x128xf32>
    %61 = arith.mulf %56, %60 : vector<8x128xf32>
    %62 = tpu.concatenate %50, %61 in 1 : vector<8x128xf32>, vector<8x128xf32> -> vector<8x256xf32>
    %c0_33 = arith.constant 0 : index
    %c0_34 = arith.constant 0 : index
    %63 = vector.load %arg11[%c0_33, %c0_34] : memref<8x256xf32, #tpu.memory_space<vmem>>, vector<8x256xf32>
    tpu.vector_store %arg11[%c0_33, %c0_34], %62 {strides = array<i32>} : memref<8x256xf32, #tpu.memory_space<vmem>>, vector<8x256xf32>,
    return
  }
}

</mosaic_0001>

<bundles_post_ra>
// kernel: forward.1
= control target key start
LH: loop header
LB: loop body
LE: loop exit
PB: predicated region body
PF: predicated region fallthrough
CT: control target
= control target key end

     0   :  { %16 = vsyncpa [#allocation3], 0  ;;  %s1012_s0 = inlined_call_operand.vmem [shape: f32[8,4], index: 0, kind: input, shape index: {}]   ;;  %s1013_s1 = inlined_call_operand.vmem [shape: f32[4,32], index: 1, kind: input, shape index: {}]   ;;  %s1014_s2 = inlined_call_operand.vmem [shape: f32[1,32], index: 2, kind: input, shape index: {}]   ;;  %s1015_s3 = inlined_call_operand.hbm [shape: f32[32,64], index: 3, kind: input, shape index: {}]   ;;  %s1016_s4 = inlined_call_operand.vmem [shape: f32[1,64], index: 4, kind: input, shape index: {}]   ;;  %s1017_s5 = inlined_call_operand.hbm [shape: f32[64,128], index: 5, kind: input, shape index: {}]   ;;  %s1018_s6 = inlined_call_operand.vmem [shape: f32[1,128], index: 6, kind: input, shape index: {}]   ;;  %s1019_s7 = inlined_call_operand.hbm [shape: f32[64,128], index: 7, kind: input, shape index: {}]   ;;  %s1020_s8 = inlined_call_operand.vmem [shape: f32[1,128], index: 8, kind: input, shape index: {}]   ;;  %s1021_s9 = inlined_call_operand.hbm [shape: f32[64,256], index: 9, kind: input, shape index: {}]   ;;  %s1022_s10 = inlined_call_operand.vmem [shape: f32[1,256], index: 10, kind: input, shape index: {}]   ;;  %s1023_s11 = inlined_call_operand.vmem [shape: f32[8,256], index: 11, kind: output, shape index: {}]  }
   0x1   :  { %17 = vsyncpa [#allocation5], 0 }
   0x2   :  { %18 = vsyncpa [#allocation8], 0  ;;  %s829_s17 = smov [#allocation4]   ;;  %s830_s19 = smov [#allocation2]  }
   0x3   :  { %s44_s18 = sshll.u32 %s829_s17, 4  ;;  %s30_s20 = sshll.u32 %s830_s19, 4  ;;  %s45_s18 = int_to_ptr.vmem [resolvable:$true] %s44_s18  ;;  %s901_s20 = int_to_ptr.vmem [resolvable:$true] %s30_s20 }
   0x4   :  { %s735_s23 = scalar_lea.hbm %s1017_s5, 1024 }
   0x5   :  { %p736_p0 = scmp.ne.s32.totalorder %s1017_s5, %s735_s23  ;;  %p739_p1 = scmp.lt.u32.totalorder %s735_s23, %s1017_s5 }
   0x7   :  { %p741_p2 = pnand %p739_p1, %p736_p0 }
   0x9   :  { %744 = shalt.err (!%p741_p2)
}
   0xa   :  { %s745_s28 = scalar_lea.vmem %s45_s18, 1024  ;;  %p750_p4 = scmp.lt.s32.totalorder %s45_s18, %s45_s18 }
   0xb   :  { %p746_p3 = scmp.ne.s32.totalorder %s45_s18, %s745_s28  ;;  %p751_p5 = scmp.lt.s32.totalorder %s745_s28, %s745_s28 }
   0xd   :  { %p752_p6 = por %p751_p5, %p750_p4 }
   0xf   :  { %p753_p7 = pnand %p752_p6, %p746_p3 }
  0x11   :  { %756 = shalt.err (!%p753_p7)
}
  0x12   :  { %s831_s29 = smov 128   ;;  %s832_s30 = smov 8  }
  0x13   :  { %50 = dma.hbm_to_vmem [thread:$0]  %s1017_s5, 1024, %s45_s18, [#allocation5], %s831_s29, %s831_s29, %s832_s30  }
  0x14   :  { %s757_s16 = scalar_lea.hbm %s1015_s3, 512 }
  0x15   :  { %p758_p8 = scmp.ne.s32.totalorder %s1015_s3, %s757_s16  ;;  %p761_p9 = scmp.lt.u32.totalorder %s757_s16, %s1015_s3 }
  0x17   :  { %p763_p10 = pnand %p761_p9, %p758_p8 }
  0x19   :  { %766 = shalt.err (!%p763_p10)
}
  0x1a   :  { %s767_s23 = scalar_lea.vmem %s901_s20, 512  ;;  %p772_p12 = scmp.lt.s32.totalorder %s901_s20, %s901_s20 }
  0x1b   :  { %p768_p11 = scmp.ne.s32.totalorder %s901_s20, %s767_s23  ;;  %p773_p13 = scmp.lt.s32.totalorder %s767_s23, %s767_s23 }
  0x1d   :  { %p774_p0 = por %p773_p13, %p772_p12 }
  0x1f   :  { %p775_p1 = pnand %p774_p0, %p768_p11 }
  0x21   :  { %778 = shalt.err (!%p775_p1)
}
  0x22   :  { %36 = dma.hbm_to_vmem [thread:$0]  %s1015_s3, 512, %s901_s20, [#allocation3], %s831_s29, %s831_s29, %s832_s30  }
  0x23   :  { %s833_s24 = smov [#allocation6]   ;;  %s834_s26 = smov [#allocation7]  }
  0x24   :  { %s58_s25 = sshll.u32 %s833_s24, 4  ;;  %s72_s27 = sshll.u32 %s834_s26, 4  ;;  %s59_s25 = int_to_ptr.vmem [resolvable:$true] %s58_s25  ;;  %s938_s27 = int_to_ptr.vmem [resolvable:$true] %s72_s27 }
  0x25   :  { %s779_s13 = scalar_lea.hbm %s1019_s7, 1024 }
  0x26   :  { %p780_p2 = scmp.ne.s32.totalorder %s1019_s7, %s779_s13  ;;  %p783_p3 = scmp.lt.u32.totalorder %s779_s13, %s1019_s7 }
  0x28   :  { %p785_p4 = pnand %p783_p3, %p780_p2 }
  0x2a   :  { %788 = shalt.err (!%p785_p4)
}
  0x2b   :  { %s789_s3 = scalar_lea.vmem %s59_s25, 1024  ;;  %p794_p6 = scmp.lt.s32.totalorder %s59_s25, %s59_s25 }
  0x2c   :  { %p790_p5 = scmp.ne.s32.totalorder %s59_s25, %s789_s3  ;;  %p795_p7 = scmp.lt.s32.totalorder %s789_s3, %s789_s3 }
  0x2e   :  { %p796_p8 = por %p795_p7, %p794_p6 }
  0x30   :  { %p797_p9 = pnand %p796_p8, %p790_p5 }
  0x32   :  { %800 = shalt.err (!%p797_p9)
}
  0x33   :  { %64 = dma.hbm_to_vmem [thread:$0]  %s1019_s7, 1024, %s59_s25, [#allocation5], %s831_s29, %s831_s29, %s832_s30  }
  0x34   :  { %s801_s23 = scalar_lea.hbm %s1021_s9, 2048 }
  0x35   :  { %p802_p10 = scmp.ne.s32.totalorder %s1021_s9, %s801_s23  ;;  %p805_p11 = scmp.lt.u32.totalorder %s801_s23, %s1021_s9 }
  0x37   :  { %p807_p12 = pnand %p805_p11, %p802_p10 }
  0x39   :  { %810 = shalt.err (!%p807_p12)
}
  0x3a   :  { %s811_s28 = scalar_lea.vmem %s938_s27, 2048  ;;  %p816_p0 = scmp.lt.s32.totalorder %s938_s27, %s938_s27 }
  0x3b   :  { %p812_p13 = scmp.ne.s32.totalorder %s938_s27, %s811_s28  ;;  %p817_p1 = scmp.lt.s32.totalorder %s811_s28, %s811_s28 }
  0x3d   :  { %p818_p2 = por %p817_p1, %p816_p0 }
  0x3f   :  { %p819_p3 = pnand %p818_p2, %p812_p13 }
  0x41   :  { %822 = shalt.err (!%p819_p3)
}
  0x42   :  { %s835_s7 = smov 256   ;;  %s836_s29 = smov 16  }
  0x43   :  { %78 = dma.hbm_to_vmem [thread:$0]  %s1021_s9, 2048, %s938_s27, [#allocation8], %s835_s7, %s835_s7, %s836_s29  }
  0x44   :  { %823 = dma.done.wait [#allocation3], 512  }
  0x45   :  { %824 = vsyncadd [#allocation3], 4294966784 }
  0x46   :  { %825 = dma.done.wait [#allocation5], 2048  }
  0x47   :  { %826 = vsyncadd [#allocation5], 4294965248 }
  0x48   :  { %827 = dma.done.wait [#allocation8], 2048  }
  0x49   :  { %828 = vsyncadd [#allocation8], 4294965248  ;;  %v837_v0 = vmov 0.0   ;;  %vm838_vm0 = vmmov 0   ;;  %v839_v1 = vmov 0.0|0.0   ;;  %vm106_vm1 = vcmask 1043456  }
  0x4a   :  { %615 = vmatprep.subr.mxu1 %v837_v0  ;;  %617 = vmatprep.mubr.msk.f32.mxu1 %vm838_vm0, %v837_v0  ;;  %vm102_vm2 = vcmask 31744   ;;  %v94_v2 = vld [vmem:[%s1013_s1] sm:$0xf]  ;;  %v182_v5 = vld [vmem:[#allocation2 + $0x8] sm:$0xff]  ;;  %v183_v7 = vld [vmem:[#allocation2 + $0x10] sm:$0xff]  ;;  %vm192_vm3 = vcmask 261120  }
  0x4b   :  { %675 = vmatprep.subr.bf16.mxu0 %v839_v1  ;;  %647 = vmatprep.mubr.msk.f32.mxu0 %vm838_vm0, %v837_v0  ;;  %v93_v3 = vld [vmem:[%s1012_s0] sm:$0xff]  ;;  %v184_v8 = vld [vmem:[#allocation2 + $0x18] sm:$0xff]  ;;  %v268_v11 = vld [vmem:[#allocation4 + $0x8] sm:$0xff]  ;;  %vm282_vm4 = vcmask 523264   ;;  %s840_s16 = smov 64  }
  0x4c   :  { %v181_v4 = vld [vmem:[#allocation2] sm:$0xff]  ;;  %616 = vmatpush3.msk.msra.mxu1 %vm106_vm1, %v94_v2  ;;  %v673_v9 = vpack.c.bf16 %v184_v8, %v183_v7  ;;  %v269_v12 = vld [vmem:[#allocation4 + $0x10] sm:$0xff]  ;;  %v270_v14 = vld [vmem:[#allocation4 + $0x18] sm:$0xff] }
  0x4d   :  { %618 = vmatmul.mubr.msk.f32.vlgmr.msra.gmra.mrb[0].mxu1 %vm102_vm2, %v93_v3  ;;  %669 = vmatprep.subr.bf16.mxu1 %v839_v1  ;;  %v670_v6 = vpack.c.bf16 %v182_v5, %v181_v4  ;;  %v267_v10 = vld [vmem:[#allocation4] sm:$0xff]  ;;  %v679_v15 = vpack.c.bf16 %v270_v14, %v269_v12  ;;  %v272_v17 = vld [vmem:[#allocation4 + $0x28] sm:$0xff]  ;;  %v273_v24 = vld [vmem:[#allocation4 + $0x30] sm:$0xff]  ;;  %v463_v12 = vlaneseq }
  0x4e   :  { %628 = vmatprep.mubr.msk.f32.mxu1 %vm838_vm0, %v837_v0  ;;  %v676_v13 = vpack.c.bf16 %v268_v11, %v267_v10  ;;  %v271_v16 = vld [vmem:[#allocation4 + $0x20] sm:$0xff]  ;;  %v274_v25 = vld [vmem:[#allocation4 + $0x38] sm:$0xff]  ;;  %v358_v28 = vld [vmem:[#allocation6 + $0x8] sm:$0xff] }
  0x4f   :  { %671 = vmatpush3.bf16.msra.mxu1 %v670_v6  ;;  %v682_v18 = vpack.c.bf16 %v272_v17, %v271_v16  ;;  %v580_v19 = vld [vmem:[%s1014_s2] ss:$0 sm:$0xff]  ;;  %v685_v26 = vpack.c.bf16 %v274_v25, %v273_v24  ;;  %v359_v29 = vld [vmem:[#allocation6 + $0x10] sm:$0xff]  ;;  %v360_v31 = vld [vmem:[#allocation6 + $0x18] sm:$0xff] }
  0x50   :  { %672 = vmatprep.subr.bf16.mxu1 %v839_v1  ;;  %677 = vmatpush3.bf16.msra.mxu0 %v676_v13  ;;  %v357_v27 = vld [vmem:[#allocation6] sm:$0xff]  ;;  %v691_v32 = vpack.c.bf16 %v360_v31, %v359_v29  ;;  %v362_v34 = vld [vmem:[#allocation6 + $0x28] sm:$0xff]  ;;  %v363_v41 = vld [vmem:[#allocation6 + $0x30] sm:$0xff]  ;;  %v464_v13 = vshrl.u32 %v463_v12, 7 }
  0x51   :  { %678 = vmatprep.subr.bf16.mxu0 %v839_v1  ;;  %v688_v30 = vpack.c.bf16 %v358_v28, %v357_v27  ;;  %v361_v33 = vld [vmem:[#allocation6 + $0x20] sm:$0xff]  ;;  %v364_v42 = vld [vmem:[#allocation6 + $0x38] sm:$0xff]  ;;  %v446_v44 = vld [vmem:[#allocation7 + $0x8] sm:$0xff] }
  0x52   :  { %v694_v35 = vpack.c.bf16 %v362_v34, %v361_v33  ;;  %v583_v36 = vld [vmem:[%s1016_s4] ss:$0 sm:$0xff]  ;;  %v697_v43 = vpack.c.bf16 %v364_v42, %v363_v41  ;;  %v448_v45 = vld [vmem:[#allocation7 + $0x18] sm:$0xff]  ;;  %v447_v48 = vld [vmem:[#allocation7 + $0x10] sm:$0xff]  ;;  %v465_v14 = vsub.s32 0, %v464_v13  ;;  %v469_v16 = vsub.s32 1, %v464_v13 }
  0x53   :  { %674 = vmatpush3.bf16.msra.mxu1 %v673_v9  ;;  %v445_v46 = vld [vmem:[#allocation7] sm:$0xff]  ;;  %v699_v47 = vpack.c.bf16 %v448_v45, %v446_v44  ;;  %v450_v49 = vld [vmem:[#allocation7 + $0x28] sm:$0xff]  ;;  %v452_v50 = vld [vmem:[#allocation7 + $0x38] sm:$0xff] }
  0x54   :  { %687 = vmatprep.subr.bf16.mxu1 %v839_v1  ;;  %680 = vmatpush3.bf16.msra.mxu0 %v679_v15  ;;  %v701_v51 = vpack.c.bf16 %v447_v48, %v445_v46  ;;  %v703_v52 = vpack.c.bf16 %v452_v50, %v450_v49  ;;  %v449_v53 = vld [vmem:[#allocation7 + $0x20] sm:$0xff]  ;;  %v451_v54 = vld [vmem:[#allocation7 + $0x30] sm:$0xff]  ;;  %v454_v55 = vld [vmem:[#allocation7 + $0x48] sm:$0xff] }
  0x55   :  { %681 = vmatprep.subr.bf16.mxu0 %v839_v1  ;;  %v456_v56 = vld [vmem:[#allocation7 + $0x58] sm:$0xff]  ;;  %v705_v57 = vpack.c.bf16 %v451_v54, %v449_v53  ;;  %v453_v59 = vld [vmem:[#allocation7 + $0x40] sm:$0xff]  ;;  %v455_v60 = vld [vmem:[#allocation7 + $0x50] sm:$0xff] }
  0x56   :  { %v707_v58 = vpack.c.bf16 %v456_v56, %v454_v55  ;;  %v458_v61 = vld [vmem:[#allocation7 + $0x68] sm:$0xff]  ;;  %v460_v62 = vld [vmem:[#allocation7 + $0x78] sm:$0xff]  ;;  %v709_v63 = vpack.c.bf16 %v455_v60, %v453_v59  ;;  %v459_v2 = vld [vmem:[#allocation7 + $0x70] sm:$0xff] }
  0x57   :  { %v585_v4 = vld [vmem:[%s1018_s6] ss:$0 sm:$0xff] }
  0x58   :  { %683 = vmatpush3.bf16.msra.mxu0 %v682_v18  ;;  %v461_v15 = vld [vmem:[%s1022_s10] sm:$0x3] }
  0x59   :  { %684 = vmatprep.subr.bf16.mxu0 %v839_v1  ;;  %v466_v17 = vrot.slane %v461_v15, %v465_v14  ;;  %v470_v18 = vrot.slane %v461_v15, %v469_v16 }
  0x5c   :  { %686 = vmatpush3.bf16.msra.mxu0 %v685_v26 }
  0x5d   :  { %700 = vmatprep.subr.bf16.mxu0 %v699_v47 }
 0x120   :  { %v176_v20 = vpop.f32.mrb[0].mxu1 }
 0x121   :  { %v177_v21 = vadd.f32 %v580_v19, %v176_v20  ;;  %v619_v22 = vpop.f32.mrb[1].mxu1 }
 0x123   :  { %v180_v23 = vmax.f32 %v177_v21, 0.0 }
 0x125   :  { %629 = vmatmul.mubr.msk.f32.vlgmr.msra.gmra.mrb[2].mxu1 %vm192_vm3, %v180_v23  ;;  %v587_v23 = vld [vmem:[%s1020_s8] ss:$0 sm:$0xff] }
 0x126   :  { %666 = vmatprep.mubr.msk.f32.mxu1 %vm838_vm0, %v837_v0  ;;  %689 = vmatpush3.bf16.msra.mxu1 %v688_v30 }
 0x127   :  { %690 = vmatprep.subr.bf16.mxu1 %v839_v1 }
 0x12a   :  { %692 = vmatpush3.bf16.msra.mxu1 %v691_v32 }
 0x12b   :  { %693 = vmatprep.subr.bf16.mxu1 %v839_v1 }
 0x12e   :  { %695 = vmatpush3.bf16.msra.mxu1 %v694_v35 }
 0x12f   :  { %696 = vmatprep.subr.bf16.mxu1 %v839_v1  ;;  %v457_v1 = vld [vmem:[#allocation7 + $0x60] sm:$0xff] }
 0x130   :  { %v713_v3 = vpack.c.bf16 %v459_v2, %v457_v1 }
 0x132   :  { %698 = vmatpush3.bf16.msra.mxu1 %v697_v43 }
 0x1f8   :  { %v262_v37 = vpop.f32.mrb[2].mxu1 }
 0x1f9   :  { %v263_v38 = vadd.f32 %v583_v36, %v262_v37  ;;  %v630_v39 = vpop.f32.mrb[3].mxu1 }
 0x1fb   :  { %v266_v40 = vmax.f32 %v263_v38, 0.0 }
 0x1fd   :  { %648 = vmatmul.mubr.msk.f32.vlgmr.msra.gmra.mrb[0].mxu0 %vm282_vm4, %v266_v40 }
 0x1fe   :  { %541 = vmatprep.mubr.f32.mxu0 %v837_v0  ;;  %702 = vmatpush1.bf16.msra.mxu0 %v701_v51  ;;  %v711_v0 = vpack.c.bf16 %v460_v62, %v458_v61 }
 0x1ff   :  { %704 = vmatprep.subr.bf16.mxu0 %v703_v52 }
 0x202   :  { %706 = vmatpush1.bf16.msra.mxu0 %v705_v57 }
 0x203   :  { %708 = vmatprep.subr.bf16.mxu0 %v707_v58 }
 0x206   :  { %710 = vmatpush1.bf16.msra.mxu0 %v709_v63 }
 0x207   :  { %712 = vmatprep.subr.bf16.mxu0 %v711_v0 }
 0x20a   :  { %714 = vmatpush1.bf16.msra.mxu0 %v713_v3 }
 0x2d0   :  { %v352_v5 = vpop.f32.mrb[0].mxu0 }
 0x2d1   :  { %v353_v6 = vadd.f32 %v585_v4, %v352_v5  ;;  %v649_v7 = vpop.f32.mrb[1].mxu0 }
 0x2d3   :  { %v356_v8 = vmax.f32 %v353_v6, 0.0 }
 0x2d5   :  { %473 = vrot.lane.b32.xlu0 %v356_v8, %s840_s16  ;;  %667 = vmatmul.mubr.msk.f32.vlgmr.msra.gmra.mrb[4].mxu1 %vm282_vm4, %v356_v8 }
 0x347   :  { %v474_v9 = vpop.permute.xlu0 %473 }
 0x348   :  { %589 = vmatmul.mubr.msk.f32.vlgmr.msra.gmra.mrb[2].mxu0 %vm282_vm4, %v474_v9 }
 0x3a8   :  { %v441_v10 = vpop.f32.mrb[4].mxu1 }
 0x3a9   :  { %v668_v11 = vpop.f32.mrb[5].mxu1  ;;  %v442_v25 = vadd.f32 %v587_v23, %v441_v10 }
 0x41b   :  { %v543_v19 = vpop.f32.mrb[2].mxu0 }
 0x41c   :  { %v544_v20 = vadd.f32 %v543_v19, %v466_v17  ;;  %v545_v21 = vpop.f32.mrb[3].mxu0 }
 0x41d   :  { %v546_v22 = vadd.f32 %v545_v21, %v470_v18 }
 0x41f   :  { %v548_v24 = vadd.f32 %v546_v22, %v544_v20 }
 0x421   :  { %v549_v26 = vmul.f32 0.5, %v548_v24 }
 0x423   :  { %v550_v27 = vsub.f32 %v442_v25, %v549_v26 }
 0x425   :  { %v561_v28 = vadd.f32 %v550_v27, %v546_v22  ;;  %v551_v29 = vadd.f32 %v550_v27, %v544_v20 }
 0x427   :  { %562 = vmax.xlane.f32.xlu1 %v561_v28  ;;  %552 = vmax.xlane.f32.xlu0 %v551_v29 }
 0x4b4   :  { %v563_v30 = vpop.xlane.xlu1 %562  ;;  %v553_v31 = vpop.xlane.xlu0 %552 }
 0x4b5   :  { %v554_v32 = vsub.f32 %v551_v29, %v553_v31  ;;  %v564_v33 = vsub.f32 %v561_v28, %v563_v30 }
 0x4b7   :  { %v555_v34 = vmul.f32 1.442695, %v554_v32  ;;  %v565_v35 = vmul.f32 1.442695, %v564_v33 }
 0x4b9   :  { %727 = vpow2.f32 %v555_v34 }
 0x4ba   :  { %729 = vpow2.f32 %v565_v35 }
 0x4c3   :  { %v728_v36 = vpop.eup %727 }
 0x4c4   :  { %557 = vadd.xlane.f32.xlu1 %v728_v36  ;;  %v730_v37 = vpop.eup %729 }
 0x4c8   :  { %567 = vadd.xlane.f32.xlu1 %v730_v37 }
 0x551   :  { %v558_v38 = vpop.xlane.xlu1 %557 }
 0x552   :  { %731 = vrcp.f32 %v558_v38 }
 0x555   :  { %v568_v39 = vpop.xlane.xlu1 %567 }
 0x556   :  { %733 = vrcp.f32 %v568_v39 }
 0x55c   :  { %v732_v40 = vpop.eup %731 }
 0x55d   :  { %v560_v41 = vmul.f32 %v732_v40, %v728_v36 }
 0x55f   :  { %571 = vst [vmem:[%s1023_s11] sm:$0xff] %v560_v41 }
 0x560   :  { %v734_v42 = vpop.eup %733 }
 0x561   :  { %v570_v43 = vmul.f32 %v734_v42, %v730_v37 }
 0x563   :  { %572 = vst [vmem:[%s1023_s11 + $0x8] sm:$0xff] %v570_v43 }
 0x564   :  { %577 = vsyncpa [#allocation3], 1 }
 0x565   :  { %578 = vsyncpa [#allocation5], 1 }
 0x566   :  { %579 = vsyncpa [#allocation8], 1 }

</bundles_post_ra>
